<compile_context>
chip_gen: v5e
topology: v5e:2x2
jax: 0.10.0
libtpu: 0.0.40
codegen_flags: <defaults>
</compile_context>

<pallas_src>
import functools

import numpy as np
import jax
import jax.numpy as jnp
from jax.experimental import pallas as pl
from jax.experimental.pallas import tpu as pltpu


def _round_up(x, m):
    return ((x + m - 1) // m) * m


# ---------------------------------------------------------------------------
# Kernel 1: VMEM-resident fused table + in-kernel (multi-hot matmul) gather.
# ---------------------------------------------------------------------------
def fm_table_kernel(bias_ref, idx_ref, wt_ref, out_ref, *, embed_dim, rows_pad):
    # bias_ref: SMEM (1,)              float32
    # idx_ref : VMEM (F, TB)           int32   -- offset indices, batch on lanes
    # wt_ref  : VMEM (3*rows_pad, Vp)  float32 -- exact bf16 hi/mid/lo planes of
    #            the fused table rows [V^T ; (V*V)^T ; w^T ; zero pad], resident
    # out_ref : VMEM (1, TB)           float32 -- lane-dense output slab
    num_fields, tb = idx_ref.shape
    vp = wt_ref.shape[1]

    # Multi-hot field counts Z^T: (Vp, TB), batch on lanes.  Pure VPU work.
    iota_v = jax.lax.broadcasted_iota(jnp.int32, (vp, tb), 0)
    z = jnp.zeros((vp, tb), jnp.float32)
    for f in range(num_fields):                        # static unroll, F is small
        row = idx_ref[f:f + 1, :]                      # (1, TB)
        z = z + (iota_v == row).astype(jnp.float32)

    # Fused gather + field reduction on the MXU: (3*rows_pad, TB), f32 accum.
    rr = jnp.dot(wt_ref[...], z, preferred_element_type=jnp.float32)
    # Recombine the exact bf16 hi/mid/lo planes -> f32-accurate result even if
    # the lowering truncates matmul operands to bf16.
    r = rr[0:rows_pad] + rr[rows_pad:2 * rows_pad] + rr[2 * rows_pad:3 * rows_pad]

    s = r[0:embed_dim]                                 # (D, TB)  sum_f e_f
    q = r[embed_dim:2 * embed_dim]                     # (D, TB)  sum_f e_f**2
    lin = r[2 * embed_dim:2 * embed_dim + 1]           # (1, TB)  sum_f w[idx_f]

    ix = jnp.sum(s * s - q, axis=0, keepdims=True)     # (1, TB)
    out_ref[...] = lin + bias_ref[0] + 0.5 * ix


def _bf16_split3(x):
    """Split f32 into three exactly-bf16-representable planes (hi+mid+lo ~ x)."""
    hi = x.astype(jnp.bfloat16).astype(jnp.float32)
    mid = (x - hi).astype(jnp.bfloat16).astype(jnp.float32)
    lo = (x - hi - mid).astype(jnp.bfloat16).astype(jnp.float32)
    return hi, mid, lo


def _fm_forward_resident(idx, emb_table, fc_table, bias, tb):
    """idx: (B, F) int32 already offset.  Tables stay resident in VMEM."""
    b, num_fields = idx.shape
    vocab, embed_dim = emb_table.shape
    vp = _round_up(vocab, 128)
    rows_pad = _round_up(2 * embed_dim + 1, 8)

    # Fused table rows: [0:D) = V^T, [D:2D) = (V*V)^T, [2D] = w^T, rest zeros.
    wt = jnp.zeros((rows_pad, vp), jnp.float32)
    wt = wt.at[0:embed_dim, 0:vocab].set(emb_table.T)
    wt = wt.at[embed_dim:2 * embed_dim, 0:vocab].set((emb_table * emb_table).T)
    wt = wt.at[2 * embed_dim, 0:vocab].set(fc_table[:, 0])
    wt3 = jnp.concatenate(_bf16_split3(wt), axis=0)           # (3*rows_pad, Vp)

    num_tiles = pl.cdiv(b, tb)
    b_pad = num_tiles * tb
    # Pad only the cheap index stream (never gathered slabs); padded lanes read
    # table row 0 and are sliced away at the end.
    idx_t = idx.T                                             # (F, B) batch minor
    if b_pad != b:
        idx_t = jnp.pad(idx_t, ((0, 0), (0, b_pad - b)))

    kernel = functools.partial(fm_table_kernel, embed_dim=embed_dim,
                               rows_pad=rows_pad)
    out = pl.pallas_call(
        kernel,
        out_shape=jax.ShapeDtypeStruct((1, b_pad), jnp.float32),
        grid=(num_tiles,),
        in_specs=[
            pl.BlockSpec(memory_space=pltpu.MemorySpace.SMEM),      # bias scalar
            pl.BlockSpec((num_fields, tb), lambda i: (0, i)),       # indices
            pl.BlockSpec((3 * rows_pad, vp), lambda i: (0, 0)),     # resident table
        ],
        out_specs=pl.BlockSpec((1, tb), lambda i: (0, i)),
        compiler_params=pltpu.CompilerParams(
            # TODO(synk): on v7x use CORE_PARALLEL / an explicit core_map so both
            # TensorCores receive batch tiles; "parallel" is kept because it is
            # safe on every generation.
            dimension_semantics=("parallel",),
            vmem_limit_bytes=48 * 1024 * 1024,
        ),
    )(bias, idx_t, wt3)
    return out[0, :b]                                         # drop padded lanes


# ---------------------------------------------------------------------------
# Kernel 2: streaming fallback (XLA gather in the wrapper, slabs in HBM).
# ---------------------------------------------------------------------------
def fm_stream_kernel(bias_ref, lin_ref, emb_ref, out_ref):
    # bias_ref: SMEM (1,)        float32
    # lin_ref : VMEM (1, TB)     float32    -- linear term pre-reduced over fields
    # emb_ref : VMEM (F, D, TB)  f32/bf16   -- gathered embeddings, batch on lanes
    # out_ref : VMEM (1, TB)     float32    -- lane-dense output slab
    num_fields = emb_ref.shape[0]
    # Per-field accumulation bounds the live set to two (D, TB) f32 slabs plus
    # the current field slice (no full-block emb / emb*emb temporaries).
    e = emb_ref[0].astype(jnp.float32)
    s = e
    q = e * e
    for f in range(1, num_fields):                     # static unroll, F is small
        e = emb_ref[f].astype(jnp.float32)
        s = s + e
        q = q + e * e
    ix = jnp.sum(s * s - q, axis=0, keepdims=True)     # (1, TB)
    out_ref[...] = lin_ref[...] + bias_ref[0] + 0.5 * ix


def _fm_forward_stream(idx, emb_table, fc_table, bias, tb, stream_dtype):
    """idx: (B, F) int32 already offset.  XLA gathers; kernel streams slabs."""
    b, num_fields = idx.shape
    embed_dim = emb_table.shape[1]
    num_tiles = pl.cdiv(b, tb)
    b_pad = num_tiles * tb
    if b_pad != b:
        # Pad the cheap (B, F) index array, never the gathered/transposed slabs.
        idx = jnp.pad(idx, ((0, b_pad - b), (0, 0)))

    # First-order term pre-reduced over fields in the wrapper (fuses with the
    # gather) -> a single (1, B) stream instead of a sublane-padded (F, TB) one.
    lin_sum = jnp.sum(jnp.take(fc_table[:, 0], idx, axis=0), axis=1)
    lin_sum = lin_sum.reshape(1, b_pad)

    # Gather + move batch onto the lane axis.  Optionally stream bf16 (accum
    # stays f32 in the kernel).
    emb = jnp.take(emb_table.astype(stream_dtype), idx, axis=0)   # (Bp, F, D)
    emb_t = jnp.transpose(emb, (1, 2, 0))                         # (F, D, Bp)
    # TODO(synk): this batch-to-minor transpose is an extra HBM round trip of the
    # dominant stream; a gather that lands batch-minor (pre-transposed table /
    # column gather) should replace it once profiled.

    out = pl.pallas_call(
        fm_stream_kernel,
        out_shape=jax.ShapeDtypeStruct((1, b_pad), jnp.float32),
        grid=(num_tiles,),
        in_specs=[
            pl.BlockSpec(memory_space=pltpu.MemorySpace.SMEM),      # bias scalar
            pl.BlockSpec((1, tb), lambda i: (0, i)),                # linear sums
            pl.BlockSpec((num_fields, embed_dim, tb), lambda i: (0, 0, i)),
        ],
        out_specs=pl.BlockSpec((1, tb), lambda i: (0, i)),
        compiler_params=pltpu.CompilerParams(
            dimension_semantics=("parallel",),
            vmem_limit_bytes=48 * 1024 * 1024,
        ),
    )(bias, lin_sum, emb_t)
    return out[0, :b]


# ---------------------------------------------------------------------------
# Top-level forward (path selection + tile sizing).
# ---------------------------------------------------------------------------
def fm_forward(x_idx, emb_table, fc_table, bias, offsets, *, tb=None,
               stream_dtype=jnp.float32, force_stream=False):
    """FactorizationMachineModel.forward.  x_idx: int32 (B, F) -> float32 (B,)."""
    b, _ = x_idx.shape
    vocab, embed_dim = emb_table.shape
    idx = (x_idx + offsets[None, :]).astype(jnp.int32)            # (B, F)

    vp = _round_up(vocab, 128)
    rows_pad = _round_up(2 * embed_dim + 1, 8)
    table_bytes = 3 * rows_pad * vp * 4
    use_resident = ((not force_stream) and vp <= 2048
                    and table_bytes <= 4 * 1024 * 1024)

    if use_resident:
        if tb is None:
            tb = min(4096, max(128, pl.next_power_of_2(b)))
            # keep the per-step (Vp, TB) multi-hot slab (and its iota) modest
            while tb > 128 and 2 * vp * tb * 4 > 8 * 1024 * 1024:
                tb //= 2
        assert tb % 128 == 0 and tb >= 128
        return _fm_forward_resident(idx, emb_table, fc_table, bias, tb)

    if tb is None:
        # Big tiles amortize the ~0.35us/step grid overhead; double-buffered
        # (F, D, TB) blocks still fit VMEM on every generation at this cap.
        tb = min(16384, max(128, pl.next_power_of_2(b)))
    assert tb % 128 == 0 and tb >= 128
    return _fm_forward_stream(idx, emb_table, fc_table, bias, tb, stream_dtype)


def reference_forward(x_idx, emb_table, fc_table, bias, offsets):
    idx = x_idx + offsets[None, :]
    emb = jnp.take(emb_table, idx, axis=0)                # (B, F, D)
    lin = jnp.take(fc_table[:, 0], idx, axis=0)           # (B, F)
    linear_term = jnp.sum(lin, axis=1, keepdims=True) + bias[0]
    sos = jnp.sum(emb, axis=1) ** 2
    ssq = jnp.sum(emb ** 2, axis=1)
    ix = 0.5 * jnp.sum(sos - ssq, axis=1, keepdims=True)
    return (linear_term + ix)[:, 0]


if __name__ == "__main__":
    # Small, deterministic problem: 4 fields, embed_dim 16, vocab 100.
    field_dims = (10, 20, 30, 40)
    embed_dim = 16
    num_fields = len(field_dims)
    vocab = int(np.sum(field_dims))
    offsets = jnp.asarray(
        np.concatenate([[0], np.cumsum(field_dims)[:-1]]).astype(np.int32))

    key = jax.random.PRNGKey(0)
    k_emb, k_fc, k_bias, k_x = jax.random.split(key, 4)

    # Parameters (deterministic synthetic init, matching module shapes):
    #   embedding.embedding.weight : (sum(field_dims), embed_dim)
    #   linear.fc.weight           : (sum(field_dims), 1)
    #   linear.bias                : (1,)
    emb_table = jax.random.normal(k_emb, (vocab, embed_dim), jnp.float32) * 0.1
    fc_table = jax.random.normal(k_fc, (vocab, 1), jnp.float32) * 0.1
    bias = jax.random.normal(k_bias, (1,), jnp.float32)

    # TODO(synk): MultiMLPEmb submodule is constructed in __init__ but never
    # used in forward(); it is intentionally omitted here.

    maxes = jnp.asarray(field_dims, dtype=jnp.int32)
    fwd = jax.jit(fm_forward,
                  static_argnames=("tb", "stream_dtype", "force_stream"))

    def make_x(k, batch):
        return (jax.random.randint(k, (batch, num_fields), 0, 10_000, jnp.int32)
                % maxes[None, :]).astype(jnp.int32)

    # Check 1: resident-table path, batch=8 (single zero-padded tile).
    x1 = make_x(k_x, 8)
    out1 = jax.block_until_ready(fwd(x1, emb_table, fc_table, bias, offsets))
    ref1 = reference_forward(x1, emb_table, fc_table, bias, offsets)
    np.testing.assert_allclose(np.asarray(out1), np.asarray(ref1),
                               rtol=1e-5, atol=1e-5)
    assert out1.shape == (8,)

    # Check 2: resident-table path, batch=300 with tb=128 -> 3 grid steps, the
    # resident table block is reused (constant index_map), padded tail tile.
    x2 = make_x(jax.random.fold_in(k_x, 1), 300)
    out2 = jax.block_until_ready(
        fwd(x2, emb_table, fc_table, bias, offsets, tb=128))
    ref2 = reference_forward(x2, emb_table, fc_table, bias, offsets)
    np.testing.assert_allclose(np.asarray(out2), np.asarray(ref2),
                               rtol=1e-5, atol=1e-5)
    assert out2.shape == (300,)

    # Check 3: streaming fallback path (large-vocab case), f32 stream.
    out3 = jax.block_until_ready(
        fwd(x2, emb_table, fc_table, bias, offsets, tb=128, force_stream=True))
    np.testing.assert_allclose(np.asarray(out3), np.asarray(ref2),
                               rtol=1e-5, atol=1e-5)

    # Check 4: streaming path with a bf16 activation stream (f32 accumulation
    # in-kernel); loose tolerance covers the bf16 quantization of the stream.
    out4 = jax.block_until_ready(
        fwd(x2, emb_table, fc_table, bias, offsets, tb=256,
            force_stream=True, stream_dtype=jnp.bfloat16))
    np.testing.assert_allclose(np.asarray(out4), np.asarray(ref2),
                               rtol=3e-2, atol=3e-2)

    print("KERNEL_OK")
</pallas_src>

<mosaic_0001>
module attributes {stable_mosaic.version = 11 : i64} {
  func.func @fm_table_kernel(%arg0: i32, %arg1: memref<1xf32, #tpu.memory_space<smem>>, %arg2: memref<4x128xi32, #tpu.memory_space<vmem>>, %arg3: memref<120x128xf32, #tpu.memory_space<vmem>>, %arg4: memref<1x128xf32, #tpu.memory_space<vmem>>) attributes {dimension_semantics = [#tpu.dimension_semantics<parallel>], iteration_bounds = array<i64: 1>, scalar_prefetch = 0 : i64, scratch_operands = 0 : i64, tpu.core_type = #tpu.core_type<tc>, window_params = [{transform_indices = @transform_0, window_bounds = array<i64: 1>}, {transform_indices = @transform_1, window_bounds = array<i64: 4, 128>}, {pipeline_mode = #tpu.pipeline_mode<synchronous>, transform_indices = @transform_2, window_bounds = array<i64: 120, 128>}, {transform_indices = @transform_3, window_bounds = array<i64: 1, 128>}]} {
    %0 = tpu.iota {dimensions = array<i32: 0>} : vector<128x128xi32>
    %cst = arith.constant 0.000000e+00 : f32
    %1 = vector.broadcast %cst : f32 to vector<128x128xf32>
    %c0 = arith.constant 0 : index
    %c0_0 = arith.constant 0 : index
    %2 = vector.load %arg2[%c0, %c0_0] : memref<4x128xi32, #tpu.memory_space<vmem>>, vector<1x128xi32>
    %3 = vector.broadcast %2 : vector<1x128xi32> to vector<128x128xi32>
    %4 = arith.cmpi eq, %0, %3 : vector<128x128xi32>
    %5 = arith.extui %4 : vector<128x128xi1> to vector<128x128xi32>
    %6 = arith.sitofp %5 : vector<128x128xi32> to vector<128x128xf32>
    %7 = arith.addf %1, %6 : vector<128x128xf32>
    %c1 = arith.constant 1 : index
    %c0_1 = arith.constant 0 : index
    %8 = vector.load %arg2[%c1, %c0_1] : memref<4x128xi32, #tpu.memory_space<vmem>>, vector<1x128xi32>
    %9 = vector.broadcast %8 : vector<1x128xi32> to vector<128x128xi32>
    %10 = arith.cmpi eq, %0, %9 : vector<128x128xi32>
    %11 = arith.extui %10 : vector<128x128xi1> to vector<128x128xi32>
    %12 = arith.sitofp %11 : vector<128x128xi32> to vector<128x128xf32>
    %13 = arith.addf %7, %12 : vector<128x128xf32>
    %c2 = arith.constant 2 : index
    %c0_2 = arith.constant 0 : index
    %14 = vector.load %arg2[%c2, %c0_2] : memref<4x128xi32, #tpu.memory_space<vmem>>, vector<1x128xi32>
    %15 = vector.broadcast %14 : vector<1x128xi32> to vector<128x128xi32>
    %16 = arith.cmpi eq, %0, %15 : vector<128x128xi32>
    %17 = arith.extui %16 : vector<128x128xi1> to vector<128x128xi32>
    %18 = arith.sitofp %17 : vector<128x128xi32> to vector<128x128xf32>
    %19 = arith.addf %13, %18 : vector<128x128xf32>
    %c3 = arith.constant 3 : index
    %c0_3 = arith.constant 0 : index
    %20 = vector.load %arg2[%c3, %c0_3] : memref<4x128xi32, #tpu.memory_space<vmem>>, vector<1x128xi32>
    %21 = vector.broadcast %20 : vector<1x128xi32> to vector<128x128xi32>
    %22 = arith.cmpi eq, %0, %21 : vector<128x128xi32>
    %23 = arith.extui %22 : vector<128x128xi1> to vector<128x128xi32>
    %24 = arith.sitofp %23 : vector<128x128xi32> to vector<128x128xf32>
    %25 = arith.addf %19, %24 : vector<128x128xf32>
    %c0_4 = arith.constant 0 : index
    %c0_5 = arith.constant 0 : index
    %26 = vector.load %arg3[%c0_4, %c0_5] : memref<120x128xf32, #tpu.memory_space<vmem>>, vector<120x128xf32>
    %cst_6 = arith.constant dense<0.000000e+00> : vector<120x128xf32>
    %27 = tpu.matmul %26, %25, %cst_6 {dimension_numbers = #tpu.dot_dimension_numbers<[1], [0], [0], [1], [0, 0, 1, 1], [], []>} : vector<120x128xf32>, vector<128x128xf32>, vector<120x128xf32> -> vector<120x128xf32>
    %28 = vector.extract_strided_slice %27 {offsets = [0, 0], sizes = [40, 128], strides = [1, 1]} : vector<120x128xf32> to vector<40x128xf32>
    %29 = vector.extract_strided_slice %27 {offsets = [40, 0], sizes = [40, 128], strides = [1, 1]} : vector<120x128xf32> to vector<40x128xf32>
    %30 = arith.addf %28, %29 : vector<40x128xf32>
    %31 = vector.extract_strided_slice %27 {offsets = [80, 0], sizes = [40, 128], strides = [1, 1]} : vector<120x128xf32> to vector<40x128xf32>
    %32 = arith.addf %30, %31 : vector<40x128xf32>
    %33 = vector.extract_strided_slice %32 {offsets = [0, 0], sizes = [16, 128], strides = [1, 1]} : vector<40x128xf32> to vector<16x128xf32>
    %34 = vector.extract_strided_slice %32 {offsets = [16, 0], sizes = [16, 128], strides = [1, 1]} : vector<40x128xf32> to vector<16x128xf32>
    %35 = vector.extract_strided_slice %32 {offsets = [32, 0], sizes = [1, 128], strides = [1, 1]} : vector<40x128xf32> to vector<1x128xf32>
    %36 = arith.mulf %33, %33 : vector<16x128xf32>
    %37 = arith.subf %36, %34 : vector<16x128xf32>
    %cst_7 = arith.constant dense<0.000000e+00> : vector<128xf32>
    %38 = vector.multi_reduction <add>, %37, %cst_7 [0] : vector<16x128xf32> to vector<128xf32>
    %39 = vector.shape_cast %38 : vector<128xf32> to vector<1x128xf32>
    %c0_8 = arith.constant 0 : index
    %40 = memref.load %arg1[%c0_8] : memref<1xf32, #tpu.memory_space<smem>>
    %41 = vector.broadcast %40 : f32 to vector<1x128xf32>
    %42 = arith.addf %35, %41 : vector<1x128xf32>
    %cst_9 = arith.constant 5.000000e-01 : f32
    %43 = vector.broadcast %cst_9 : f32 to vector<1x128xf32>
    %44 = arith.mulf %43, %39 : vector<1x128xf32>
    %45 = arith.addf %42, %44 : vector<1x128xf32>
    %c0_10 = arith.constant 0 : index
    %c0_11 = arith.constant 0 : index
    %46 = vector.load %arg4[%c0_10, %c0_11] : memref<1x128xf32, #tpu.memory_space<vmem>>, vector<1x128xf32>
    tpu.vector_store %arg4[%c0_10, %c0_11], %45 {strides = array<i32>} : memref<1x128xf32, #tpu.memory_space<vmem>>, vector<1x128xf32>,
    return
  }
  func.func @transform_0(%arg0: i32) -> i32 {
    %c0_i32 = arith.constant 0 : i32
    %c0_i32_0 = arith.constant 0 : i32
    return %c0_i32 : i32
  }
  func.func @transform_1(%arg0: i32) -> (i32, i32) {
    %c0_i32 = arith.constant 0 : i32
    %c0_i32_0 = arith.constant 0 : i32
    return %c0_i32, %arg0 : i32, i32
  }
  func.func @transform_2(%arg0: i32) -> (i32, i32) {
    %c0_i32 = arith.constant 0 : i32
    %c0_i32_0 = arith.constant 0 : i32
    %c0_i32_1 = arith.constant 0 : i32
    return %c0_i32, %c0_i32_0 : i32, i32
  }
  func.func @transform_3(%arg0: i32) -> (i32, i32) {
    %c0_i32 = arith.constant 0 : i32
    %c0_i32_0 = arith.constant 0 : i32
    return %c0_i32, %arg0 : i32, i32
  }
}

</mosaic_0001>

<bundles_post_ra>
// kernel: fm_forward.1
= control target key start
LH: loop header
LB: loop body
LE: loop exit
PB: predicated region body
PF: predicated region fallthrough
CT: control target
= control target key end

     0   :  { %v15_v0 = vlaneseq  ;;  %v521_v14 = vmov 0.0   ;;  %s795_s1 = inlined_call_operand.vmem [shape: s32[4,128], index: 1, kind: input, shape index: {}]   ;;  %s796_s2 = inlined_call_operand.vmem [shape: f32[120,128], index: 2, kind: input, shape index: {}]   ;;  %s797_s0 = inlined_call_operand.<no memory space> [shape: f32[1], index: 0, kind: input, shape index: {}]   ;;  %s798_s3 = inlined_call_operand.vmem [shape: f32[1,128], index: 3, kind: output, shape index: {}]  }
   0x1   :  { %v545_v1 = vld [vmem:[%s795_s1] ss:$0 sm:$0xff]  ;;  %v552_v3 = vld [vmem:[%s795_s1 + $0x1] ss:$0 sm:$0xff]  ;;  %v557_v4 = vld [vmem:[%s795_s1 + $0x2] ss:$0 sm:$0xff] }
   0x2   :  { %v547_v2 = vshrl.u32 %v15_v0, 7  ;;  %v562_v5 = vld [vmem:[%s795_s1 + $0x3] ss:$0 sm:$0xff] }
   0x4   :  { %v31_v6 = vadd.s32 120, %v547_v2  ;;  %v30_v7 = vadd.s32 112, %v547_v2  ;;  %v29_v8 = vadd.s32 104, %v547_v2  ;;  %v28_v9 = vadd.s32 96, %v547_v2 }
   0x5   :  { %v569_v10 = vadd.s32 88, %v547_v2  ;;  %v572_v11 = vadd.s32 80, %v547_v2  ;;  %v575_v12 = vadd.s32 72, %v547_v2  ;;  %v578_v13 = vadd.s32 64, %v547_v2 }
   0x6   :  { %vm49_vm0 = vcmp.eq.s32.totalorder %v31_v6, %v545_v1  ;;  %vm115_vm1 = vcmp.eq.s32.totalorder %v31_v6, %v552_v3  ;;  %vm181_vm2 = vcmp.eq.s32.totalorder %v31_v6, %v557_v4  ;;  %vm247_vm3 = vcmp.eq.s32.totalorder %v31_v6, %v562_v5 }
   0x7   :  { %v419_v15 = vsel %vm49_vm0, 1.0, %v521_v14  ;;  %v435_v16 = vsel %vm115_vm1, 1.0, %v521_v14  ;;  %v451_v17 = vsel %vm181_vm2, 1.0, %v521_v14  ;;  %v467_v18 = vsel %vm247_vm3, 1.0, %v521_v14 }
   0x8   :  { %v163_v19 = vadd.f32 %v435_v16, %v419_v15  ;;  %vm48_vm4 = vcmp.eq.s32.totalorder %v30_v7, %v545_v1  ;;  %vm114_vm5 = vcmp.eq.s32.totalorder %v30_v7, %v552_v3  ;;  %vm180_vm6 = vcmp.eq.s32.totalorder %v30_v7, %v557_v4 }
   0x9   :  { %v418_v20 = vsel %vm48_vm4, 1.0, %v521_v14  ;;  %v434_v21 = vsel %vm114_vm5, 1.0, %v521_v14  ;;  %v450_v22 = vsel %vm180_vm6, 1.0, %v521_v14  ;;  %vm246_vm7 = vcmp.eq.s32.totalorder %v30_v7, %v562_v5 }
   0xa   :  { %v229_v23 = vadd.f32 %v451_v17, %v163_v19  ;;  %v162_v24 = vadd.f32 %v434_v21, %v418_v20  ;;  %v466_v25 = vsel %vm246_vm7, 1.0, %v521_v14  ;;  %vm47_vm8 = vcmp.eq.s32.totalorder %v29_v8, %v545_v1 }
   0xb   :  { %v417_v26 = vsel %vm47_vm8, 1.0, %v521_v14  ;;  %vm113_vm9 = vcmp.eq.s32.totalorder %v29_v8, %v552_v3  ;;  %vm179_vm10 = vcmp.eq.s32.totalorder %v29_v8, %v557_v4  ;;  %vm245_vm11 = vcmp.eq.s32.totalorder %v29_v8, %v562_v5 }
   0xc   :  { %v295_v27 = vadd.f32 %v467_v18, %v229_v23  ;;  %v228_v28 = vadd.f32 %v450_v22, %v162_v24  ;;  %v433_v29 = vsel %vm113_vm9, 1.0, %v521_v14  ;;  %v449_v30 = vsel %vm179_vm10, 1.0, %v521_v14 }
   0xd   :  { %v161_v31 = vadd.f32 %v433_v29, %v417_v26  ;;  %v465_v32 = vsel %vm245_vm11, 1.0, %v521_v14  ;;  %vm46_vm12 = vcmp.eq.s32.totalorder %v28_v9, %v545_v1  ;;  %vm112_vm13 = vcmp.eq.s32.totalorder %v28_v9, %v552_v3 }
   0xe   :  { %311 = vmatpush.msra.mxu0 %v295_v27  ;;  %468 = vmatpush.msra.mxu1 %v295_v27  ;;  %v294_v33 = vadd.f32 %v466_v25, %v228_v28  ;;  %v416_v34 = vsel %vm46_vm12, 1.0, %v521_v14  ;;  %v432_v35 = vsel %vm112_vm13, 1.0, %v521_v14  ;;  %vm178_vm14 = vcmp.eq.s32.totalorder %v28_v9, %v557_v4 }
   0xf   :  { %469 = vmatpush.msra.mxu2 %v295_v27  ;;  %470 = vmatpush.msra.mxu3 %v295_v27  ;;  %v227_v36 = vadd.f32 %v449_v30, %v161_v31  ;;  %v160_v37 = vadd.f32 %v432_v35, %v416_v34  ;;  %v448_v38 = vsel %vm178_vm14, 1.0, %v521_v14  ;;  %vm244_vm15 = vcmp.eq.s32.totalorder %v28_v9, %v562_v5 }
  0x10   :  { %312 = vmatpush.msra.mxu0 %v294_v33  ;;  %471 = vmatpush.msra.mxu1 %v294_v33  ;;  %v464_v39 = vsel %vm244_vm15, 1.0, %v521_v14  ;;  %vm45_vm0 = vcmp.eq.s32.totalorder %v569_v10, %v545_v1  ;;  %vm111_vm1 = vcmp.eq.s32.totalorder %v569_v10, %v552_v3  ;;  %vm177_vm2 = vcmp.eq.s32.totalorder %v569_v10, %v557_v4 }
  0x11   :  { %472 = vmatpush.msra.mxu2 %v294_v33  ;;  %473 = vmatpush.msra.mxu3 %v294_v33  ;;  %v293_v40 = vadd.f32 %v465_v32, %v227_v36  ;;  %v226_v41 = vadd.f32 %v448_v38, %v160_v37  ;;  %v415_v42 = vsel %vm45_vm0, 1.0, %v521_v14  ;;  %v431_v43 = vsel %vm111_vm1, 1.0, %v521_v14 }
  0x12   :  { %v159_v44 = vadd.f32 %v431_v43, %v415_v42  ;;  %v447_v45 = vsel %vm177_vm2, 1.0, %v521_v14  ;;  %vm243_vm3 = vcmp.eq.s32.totalorder %v569_v10, %v562_v5  ;;  %vm44_vm4 = vcmp.eq.s32.totalorder %v572_v11, %v545_v1 }
  0x13   :  { %313 = vmatpush.msra.mxu0 %v293_v40  ;;  %474 = vmatpush.msra.mxu1 %v293_v40  ;;  %v292_v46 = vadd.f32 %v464_v39, %v226_v41  ;;  %v463_v47 = vsel %vm243_vm3, 1.0, %v521_v14  ;;  %v414_v48 = vsel %vm44_vm4, 1.0, %v521_v14  ;;  %vm110_vm5 = vcmp.eq.s32.totalorder %v572_v11, %v552_v3 }
  0x14   :  { %475 = vmatpush.msra.mxu2 %v293_v40  ;;  %476 = vmatpush.msra.mxu3 %v293_v40  ;;  %v225_v49 = vadd.f32 %v447_v45, %v159_v44  ;;  %v430_v50 = vsel %vm110_vm5, 1.0, %v521_v14  ;;  %vm176_vm6 = vcmp.eq.s32.totalorder %v572_v11, %v557_v4  ;;  %vm242_vm7 = vcmp.eq.s32.totalorder %v572_v11, %v562_v5 }
  0x15   :  { %314 = vmatpush.msra.mxu0 %v292_v46  ;;  %477 = vmatpush.msra.mxu1 %v292_v46  ;;  %v158_v51 = vadd.f32 %v430_v50, %v414_v48  ;;  %v446_v52 = vsel %vm176_vm6, 1.0, %v521_v14  ;;  %v462_v53 = vsel %vm242_vm7, 1.0, %v521_v14  ;;  %vm43_vm8 = vcmp.eq.s32.totalorder %v575_v12, %v545_v1 }
  0x16   :  { %478 = vmatpush.msra.mxu2 %v292_v46  ;;  %479 = vmatpush.msra.mxu3 %v292_v46  ;;  %v291_v54 = vadd.f32 %v463_v47, %v225_v49  ;;  %v413_v55 = vsel %vm43_vm8, 1.0, %v521_v14  ;;  %vm109_vm9 = vcmp.eq.s32.totalorder %v575_v12, %v552_v3  ;;  %vm175_vm10 = vcmp.eq.s32.totalorder %v575_v12, %v557_v4 }
  0x17   :  { %v224_v56 = vadd.f32 %v446_v52, %v158_v51  ;;  %v429_v57 = vsel %vm109_vm9, 1.0, %v521_v14  ;;  %v445_v58 = vsel %vm175_vm10, 1.0, %v521_v14  ;;  %vm241_vm11 = vcmp.eq.s32.totalorder %v575_v12, %v562_v5 }
  0x18   :  { %315 = vmatpush.msra.mxu0 %v291_v54  ;;  %480 = vmatpush.msra.mxu1 %v291_v54  ;;  %v157_v59 = vadd.f32 %v429_v57, %v413_v55  ;;  %v461_v60 = vsel %vm241_vm11, 1.0, %v521_v14  ;;  %vm42_vm12 = vcmp.eq.s32.totalorder %v578_v13, %v545_v1  ;;  %vm108_vm13 = vcmp.eq.s32.totalorder %v578_v13, %v552_v3 }
  0x19   :  { %481 = vmatpush.msra.mxu2 %v291_v54  ;;  %482 = vmatpush.msra.mxu3 %v291_v54  ;;  %v290_v61 = vadd.f32 %v462_v53, %v224_v56  ;;  %v412_v62 = vsel %vm42_vm12, 1.0, %v521_v14  ;;  %v428_v63 = vsel %vm108_vm13, 1.0, %v521_v14  ;;  %vm174_vm14 = vcmp.eq.s32.totalorder %v578_v13, %v557_v4 }
  0x1a   :  { %v223_v0 = vadd.f32 %v445_v58, %v157_v59  ;;  %v156_v6 = vadd.f32 %v428_v63, %v412_v62  ;;  %v444_v7 = vsel %vm174_vm14, 1.0, %v521_v14  ;;  %vm240_vm15 = vcmp.eq.s32.totalorder %v578_v13, %v562_v5 }
  0x1b   :  { %316 = vmatpush.msra.mxu0 %v290_v61  ;;  %483 = vmatpush.msra.mxu1 %v290_v61  ;;  %v460_v8 = vsel %vm240_vm15, 1.0, %v521_v14  ;;  %v23_v9 = vadd.s32 56, %v547_v2  ;;  %v22_v10 = vadd.s32 48, %v547_v2  ;;  %v21_v11 = vadd.s32 40, %v547_v2 }
  0x1c   :  { %484 = vmatpush.msra.mxu2 %v290_v61  ;;  %485 = vmatpush.msra.mxu3 %v290_v61  ;;  %v289_v12 = vadd.f32 %v461_v60, %v223_v0  ;;  %v222_v15 = vadd.f32 %v444_v7, %v156_v6  ;;  %v20_v16 = vadd.s32 32, %v547_v2  ;;  %v665_v17 = vadd.s32 24, %v547_v2 }
  0x1d   :  { %vm41_vm0 = vcmp.eq.s32.totalorder %v23_v9, %v545_v1  ;;  %vm107_vm1 = vcmp.eq.s32.totalorder %v23_v9, %v552_v3  ;;  %vm173_vm2 = vcmp.eq.s32.totalorder %v23_v9, %v557_v4  ;;  %vm239_vm3 = vcmp.eq.s32.totalorder %v23_v9, %v562_v5 }
  0x1e   :  { %317 = vmatpush.msra.mxu0 %v289_v12  ;;  %486 = vmatpush.msra.mxu1 %v289_v12  ;;  %v288_v13 = vadd.f32 %v460_v8, %v222_v15  ;;  %v411_v18 = vsel %vm41_vm0, 1.0, %v521_v14  ;;  %v427_v19 = vsel %vm107_vm1, 1.0, %v521_v14  ;;  %v443_v20 = vsel %vm173_vm2, 1.0, %v521_v14 }
  0x1f   :  { %487 = vmatpush.msra.mxu2 %v289_v12  ;;  %488 = vmatpush.msra.mxu3 %v289_v12  ;;  %v155_v21 = vadd.f32 %v427_v19, %v411_v18  ;;  %v459_v22 = vsel %vm239_vm3, 1.0, %v521_v14  ;;  %vm40_vm4 = vcmp.eq.s32.totalorder %v22_v10, %v545_v1  ;;  %vm106_vm5 = vcmp.eq.s32.totalorder %v22_v10, %v552_v3  ;;  %v304_v18 = vld [vmem:[%s796_s2 + $0x40] sm:$0xff] }
  0x20   :  { %318 = vmatpush.msra.mxu0 %v288_v13  ;;  %489 = vmatpush.msra.mxu1 %v288_v13  ;;  %v410_v23 = vsel %vm40_vm4, 1.0, %v521_v14  ;;  %v426_v24 = vsel %vm106_vm5, 1.0, %v521_v14  ;;  %vm172_vm6 = vcmp.eq.s32.totalorder %v22_v10, %v557_v4  ;;  %vm238_vm7 = vcmp.eq.s32.totalorder %v22_v10, %v562_v5  ;;  %v308_v19 = vld [vmem:[%s796_s2 + $0x60] sm:$0xff] }
  0x21   :  { %490 = vmatpush.msra.mxu2 %v288_v13  ;;  %491 = vmatpush.msra.mxu3 %v288_v13  ;;  %v221_v25 = vadd.f32 %v443_v20, %v155_v21  ;;  %v154_v26 = vadd.f32 %v426_v24, %v410_v23  ;;  %v442_v27 = vsel %vm172_vm6, 1.0, %v521_v14  ;;  %v458_v28 = vsel %vm238_vm7, 1.0, %v521_v14  ;;  %v301_v13 = vld [vmem:[%s796_s2 + $0x28] sm:$0xff]  ;;  %v298_v20 = vld [vmem:[%s796_s2 + $0x10] sm:$0xff]  ;;  %v299_v24 = vld [vmem:[%s796_s2 + $0x18] sm:$0xff] }
  0x22   :  { %vm39_vm8 = vcmp.eq.s32.totalorder %v21_v11, %v545_v1  ;;  %vm105_vm9 = vcmp.eq.s32.totalorder %v21_v11, %v552_v3  ;;  %vm171_vm10 = vcmp.eq.s32.totalorder %v21_v11, %v557_v4  ;;  %vm237_vm11 = vcmp.eq.s32.totalorder %v21_v11, %v562_v5  ;;  %v302_v21 = vld [vmem:[%s796_s2 + $0x30] sm:$0xff]  ;;  %v309_v23 = vld [vmem:[%s796_s2 + $0x68] sm:$0xff] }
  0x23   :  { %v287_v29 = vadd.f32 %v459_v22, %v221_v25  ;;  %v220_v30 = vadd.f32 %v442_v27, %v154_v26  ;;  %v409_v31 = vsel %vm39_vm8, 1.0, %v521_v14  ;;  %v425_v32 = vsel %vm105_vm9, 1.0, %v521_v14  ;;  %v305_v22 = vld [vmem:[%s796_s2 + $0x48] sm:$0xff]  ;;  %v306_v25 = vld [vmem:[%s796_s2 + $0x50] sm:$0xff] }
  0x24   :  { %v153_v33 = vadd.f32 %v425_v32, %v409_v31  ;;  %v441_v34 = vsel %vm171_vm10, 1.0, %v521_v14  ;;  %v457_v35 = vsel %vm237_vm11, 1.0, %v521_v14  ;;  %vm38_vm12 = vcmp.eq.s32.totalorder %v20_v16, %v545_v1  ;;  %v310_v26 = vld [vmem:[%s796_s2 + $0x70] sm:$0xff] }
  0x25   :  { %319 = vmatpush.msra.mxu0 %v287_v29  ;;  %492 = vmatpush.msra.mxu1 %v287_v29  ;;  %v286_v36 = vadd.f32 %v458_v28, %v220_v30  ;;  %v408_v37 = vsel %vm38_vm12, 1.0, %v521_v14  ;;  %vm104_vm13 = vcmp.eq.s32.totalorder %v20_v16, %v552_v3  ;;  %vm170_vm14 = vcmp.eq.s32.totalorder %v20_v16, %v557_v4 }
  0x26   :  { %493 = vmatpush.msra.mxu2 %v287_v29  ;;  %494 = vmatpush.msra.mxu3 %v287_v29  ;;  %v219_v38 = vadd.f32 %v441_v34, %v153_v33  ;;  %v424_v39 = vsel %vm104_vm13, 1.0, %v521_v14  ;;  %v440_v40 = vsel %vm170_vm14, 1.0, %v521_v14  ;;  %vm236_vm15 = vcmp.eq.s32.totalorder %v20_v16, %v562_v5 }
  0x27   :  { %320 = vmatpush.msra.mxu0 %v286_v36  ;;  %495 = vmatpush.msra.mxu1 %v286_v36  ;;  %v152_v41 = vadd.f32 %v424_v39, %v408_v37  ;;  %v456_v42 = vsel %vm236_vm15, 1.0, %v521_v14  ;;  %vm37_vm0 = vcmp.eq.s32.totalorder %v665_v17, %v545_v1  ;;  %vm103_vm1 = vcmp.eq.s32.totalorder %v665_v17, %v552_v3 }
  0x28   :  { %496 = vmatpush.msra.mxu2 %v286_v36  ;;  %497 = vmatpush.msra.mxu3 %v286_v36  ;;  %v285_v43 = vadd.f32 %v457_v35, %v219_v38  ;;  %v407_v44 = vsel %vm37_vm0, 1.0, %v521_v14  ;;  %v423_v45 = vsel %vm103_vm1, 1.0, %v521_v14  ;;  %vm169_vm2 = vcmp.eq.s32.totalorder %v665_v17, %v557_v4 }
  0x29   :  { %v218_v46 = vadd.f32 %v440_v40, %v152_v41  ;;  %v151_v47 = vadd.f32 %v423_v45, %v407_v44  ;;  %v439_v48 = vsel %vm169_vm2, 1.0, %v521_v14  ;;  %vm235_vm3 = vcmp.eq.s32.totalorder %v665_v17, %v562_v5  ;;  %v297_v17 = vld [vmem:[%s796_s2 + $0x8] sm:$0xff] }
  0x2a   :  { %321 = vmatpush.msra.mxu0 %v285_v43  ;;  %498 = vmatpush.msra.mxu1 %v285_v43  ;;  %v455_v49 = vsel %vm235_vm3, 1.0, %v521_v14  ;;  %v18_v50 = vadd.s32 16, %v547_v2  ;;  %v17_v51 = vadd.s32 8, %v547_v2  ;;  %vm34_vm4 = vcmp.eq.s32.totalorder %v547_v2, %v545_v1 }
  0x2b   :  { %499 = vmatpush.msra.mxu2 %v285_v43  ;;  %500 = vmatpush.msra.mxu3 %v285_v43  ;;  %v284_v52 = vadd.f32 %v456_v42, %v218_v46  ;;  %v217_v53 = vadd.f32 %v439_v48, %v151_v47  ;;  %v404_v54 = vsel %vm34_vm4, 1.0, %v521_v14  ;;  %vm100_vm5 = vcmp.eq.s32.totalorder %v547_v2, %v552_v3 }
  0x2c   :  { %vm36_vm6 = vcmp.eq.s32.totalorder %v18_v50, %v545_v1  ;;  %vm102_vm7 = vcmp.eq.s32.totalorder %v18_v50, %v552_v3  ;;  %vm168_vm8 = vcmp.eq.s32.totalorder %v18_v50, %v557_v4  ;;  %vm234_vm9 = vcmp.eq.s32.totalorder %v18_v50, %v562_v5 }
  0x2d   :  { %322 = vmatpush.msra.mxu0 %v284_v52  ;;  %501 = vmatpush.msra.mxu1 %v284_v52  ;;  %v283_v55 = vadd.f32 %v455_v49, %v217_v53  ;;  %v406_v56 = vsel %vm36_vm6, 1.0, %v521_v14  ;;  %v422_v57 = vsel %vm102_vm7, 1.0, %v521_v14  ;;  %v438_v58 = vsel %vm168_vm8, 1.0, %v521_v14 }
  0x2e   :  { %502 = vmatpush.msra.mxu2 %v284_v52  ;;  %503 = vmatpush.msra.mxu3 %v284_v52  ;;  %v150_v59 = vadd.f32 %v422_v57, %v406_v56  ;;  %v454_v60 = vsel %vm234_vm9, 1.0, %v521_v14  ;;  %vm35_vm10 = vcmp.eq.s32.totalorder %v17_v51, %v545_v1  ;;  %vm101_vm11 = vcmp.eq.s32.totalorder %v17_v51, %v552_v3 }
  0x2f   :  { %323 = vmatpush.msra.mxu0 %v283_v55  ;;  %504 = vmatpush.msra.mxu1 %v283_v55  ;;  %v405_v61 = vsel %vm35_vm10, 1.0, %v521_v14  ;;  %v421_v62 = vsel %vm101_vm11, 1.0, %v521_v14  ;;  %vm167_vm12 = vcmp.eq.s32.totalorder %v17_v51, %v557_v4  ;;  %vm233_vm13 = vcmp.eq.s32.totalorder %v17_v51, %v562_v5 }
  0x30   :  { %505 = vmatpush.msra.mxu2 %v283_v55  ;;  %506 = vmatpush.msra.mxu3 %v283_v55  ;;  %v216_v63 = vadd.f32 %v438_v58, %v150_v59  ;;  %v149_v0 = vadd.f32 %v421_v62, %v405_v61  ;;  %v437_v6 = vsel %vm167_vm12, 1.0, %v521_v14  ;;  %v453_v1 = vsel %vm233_vm13, 1.0, %v521_v14 }
  0x31   :  { %v420_v7 = vsel %vm100_vm5, 1.0, %v521_v14  ;;  %vm166_vm14 = vcmp.eq.s32.totalorder %v547_v2, %v557_v4  ;;  %vm232_vm15 = vcmp.eq.s32.totalorder %v547_v2, %v562_v5  ;;  %v296_v2 = vld [vmem:[%s796_s2] sm:$0xff]  ;;  %v303_v5 = vld [vmem:[%s796_s2 + $0x38] sm:$0xff]  ;;  %v395_v62 = vstv %s797_s0 }
  0x32   :  { %v282_v8 = vadd.f32 %v454_v60, %v216_v63  ;;  %v215_v9 = vadd.f32 %v437_v6, %v149_v0  ;;  %v148_v10 = vadd.f32 %v420_v7, %v404_v54  ;;  %v436_v11 = vsel %vm166_vm14, 1.0, %v521_v14  ;;  %v300_v4 = vld [vmem:[%s796_s2 + $0x20] sm:$0xff] }
  0x33   :  { %v452_v12 = vsel %vm232_vm15, 1.0, %v521_v14  ;;  %v307_v14 = vld [vmem:[%s796_s2 + $0x58] sm:$0xff] }
  0x34   :  { %324 = vmatpush.msra.mxu0 %v282_v8  ;;  %507 = vmatpush.msra.mxu1 %v282_v8  ;;  %v281_v15 = vadd.f32 %v453_v1, %v215_v9  ;;  %v214_v16 = vadd.f32 %v436_v11, %v148_v10 }
  0x35   :  { %508 = vmatpush.msra.mxu2 %v282_v8  ;;  %509 = vmatpush.msra.mxu3 %v282_v8 }
  0x36   :  { %325 = vmatpush.msra.mxu0 %v281_v15  ;;  %510 = vmatpush.msra.mxu1 %v281_v15  ;;  %v280_v3 = vadd.f32 %v452_v12, %v214_v16 }
  0x37   :  { %511 = vmatpush.msra.mxu2 %v281_v15  ;;  %512 = vmatpush.msra.mxu3 %v281_v15 }
  0x38   :  { %326 = vmatpush.msra.mxu0 %v280_v3  ;;  %513 = vmatpush.msra.mxu1 %v280_v3 }
  0x39   :  { %514 = vmatpush.msra.mxu2 %v280_v3  ;;  %515 = vmatpush.msra.mxu3 %v280_v3 }
  0x3a   :  { %327 = vmatmul.f32.vlgmr.msra.gmra.mxu0 %v296_v2  ;;  %339 = vmatmul.f32.vlgmr.msra.gmra.mxu1 %v300_v4 }
  0x3b   :  { %348 = vmatmul.f32.vlgmr.msra.gmra.mxu2 %v303_v5  ;;  %360 = vmatmul.f32.vlgmr.msra.gmra.mxu3 %v307_v14 }
  0x42   :  { %330 = vmatmul.f32.gmra.mxu0 %v297_v17  ;;  %342 = vmatmul.f32.gmra.mxu1 %v301_v13 }
  0x43   :  { %351 = vmatmul.f32.gmra.mxu2 %v304_v18  ;;  %363 = vmatmul.f32.gmra.mxu3 %v308_v19 }
  0x4a   :  { %333 = vmatmul.f32.gmra.mxu0 %v298_v20  ;;  %345 = vmatmul.f32.gmra.mxu1 %v302_v21 }
  0x4b   :  { %354 = vmatmul.f32.gmra.mxu2 %v305_v22  ;;  %366 = vmatmul.f32.gmra.mxu3 %v309_v23 }
  0x52   :  { %336 = vmatmul.f32.gmra.mxu0 %v299_v24 }
  0x53   :  { %357 = vmatmul.f32.gmra.mxu2 %v306_v25  ;;  %369 = vmatmul.f32.gmra.mxu3 %v310_v26 }
  0xb7   :  { %v328_v27 = vpop.f32.mrf.mxu0  ;;  %v340_v28 = vpop.f32.mrf.mxu1 }
  0xbe   :  { %v349_v29 = vpop.f32.mrf.mxu2  ;;  %v361_v31 = vpop.f32.mrf.mxu3 }
  0xbf   :  { %v331_v30 = vpop.f32.mrf.mxu0  ;;  %v343_v32 = vpop.f32.mrf.mxu1 }
  0xc0   :  { %v373_v41 = vadd.f32 %v343_v32, %v328_v27 }
  0xc6   :  { %v352_v33 = vpop.f32.mrf.mxu2  ;;  %v364_v35 = vpop.f32.mrf.mxu3 }
  0xc7   :  { %v334_v34 = vpop.f32.mrf.mxu0  ;;  %v346_v36 = vpop.f32.mrf.mxu1 }
  0xc8   :  { %v374_v39 = vadd.f32 %v346_v36, %v331_v30  ;;  %v375_v42 = vadd.f32 %v349_v29, %v334_v34 }
  0xca   :  { %v379_v43 = vadd.f32 %v374_v39, %v361_v31  ;;  %v380_v48 = vadd.f32 %v375_v42, %v364_v35 }
  0xcc   :  { %v384_v49 = vmul.f32 %v379_v43, %v379_v43 }
  0xce   :  { %v355_v37 = vpop.f32.mrf.mxu2  ;;  %v367_v44 = vpop.f32.mrf.mxu3 }
  0xcf   :  { %v337_v38 = vpop.f32.mrf.mxu0  ;;  %v377_v58 = vadd.f32 %v355_v37, %v340_v28 }
  0xd0   :  { %v376_v40 = vadd.f32 %v352_v33, %v337_v38 }
  0xd2   :  { %v381_v46 = vadd.f32 %v376_v40, %v367_v44 }
  0xd4   :  { %v386_v51 = vsub.f32 %v384_v49, %v381_v46 }
  0xd6   :  { %v358_v45 = vpop.f32.mrf.mxu2  ;;  %v370_v57 = vpop.f32.mrf.mxu3 }
  0xd7   :  { %v378_v47 = vadd.f32 %v373_v41, %v358_v45  ;;  %v382_v60 = vadd.f32 %v377_v58, %v370_v57 }
  0xd9   :  { %v383_v50 = vmul.f32 %v378_v47, %v378_v47  ;;  %v396_v0 = vadd.f32 %v395_v62, %v382_v60 }
  0xdb   :  { %v385_v52 = vsub.f32 %v383_v50, %v380_v48 }
  0xdd   :  { %v387_v53 = vadd.f32 %v386_v51, %v385_v52 }
  0xdf   :  { %v388_v54 = vrot.slane %v387_v53, 4 }
  0xe1   :  { %v389_v55 = vadd.f32 %v388_v54, %v387_v53 }
  0xe3   :  { %v390_v56 = vrot.slane %v389_v55, 2 }
  0xe5   :  { %v391_v59 = vadd.f32 %v390_v56, %v389_v55 }
  0xe7   :  { %v392_v61 = vrot.slane %v391_v59, 1 }
  0xe9   :  { %v393_v63 = vadd.f32 %v392_v61, %v391_v59 }
  0xeb   :  { %v397_v6 = vmul.f32 0.5, %v393_v63 }
  0xed   :  { %v398_v1 = vadd.f32 %v397_v6, %v396_v0 }
  0xef   :  { %399 = vst [vmem:[%s798_s3] sm:$0x1] %v398_v1 }

</bundles_post_ra>
